<compile_context>
chip_gen: v5e
topology: v5e:2x2
jax: 0.10.0
libtpu: 0.0.40
codegen_flags: <defaults>
</compile_context>

<pallas_src>
import functools

import jax
import jax.numpy as jnp
from jax.experimental import pallas as pl
from jax.experimental.pallas import tpu as pltpu


def _round_up(a: int, b: int) -> int:
    return (a + b - 1) // b * b


def _voting_kernel(x_ref, w_ref, o_ref, *, inv_v, precision):
    # x_ref: (TN, F) block of the input in its natural layout.
    # w_ref: (F, C) constant 0/1 pooling matrix (resident across grid steps).
    # o_ref: (TN, C) block of the output.
    s = jnp.dot(
        x_ref[...],
        w_ref[...],
        preferred_element_type=jnp.float32,   # f32 accumulation (bf16-safe)
        precision=precision,
    )
    o_ref[...] = (s * jnp.float32(inv_v)).astype(o_ref.dtype)


def voting_forward(x, voter_num: int, *, max_block_rows=None,
                   vmem_budget_bytes: int = 24 * 1024 * 1024):
    """Functional VotingLayer.forward: mean over groups of `voter_num` features."""
    assert x.ndim == 2, "VotingLayer expects (batch, num_classes * voter_num)"
    assert voter_num >= 1
    N, F_in = x.shape
    C = F_in // voter_num
    assert C >= 1, "feature dim smaller than voter_num"
    F = C * voter_num
    if F != F_in:
        # nn.AvgPool1d(V, V) silently drops the trailing remainder features.
        x = x[:, :F]

    itemsize = jnp.dtype(x.dtype).itemsize

    # ---- block-row (TN) selection: big lane-dense tiles, VMEM-budgeted -------
    lanes_in = _round_up(F, 128)       # VMEM lane padding of the input block
    lanes_out = _round_up(C, 128)      # VMEM lane padding of the output block
    vmem_per_row = 2 * (lanes_in + lanes_out) * itemsize   # double-buffered in + out
    tn_budget = max(8, (vmem_budget_bytes // vmem_per_row) // 8 * 8)

    TN = min(_round_up(N, 8), tn_budget)
    if max_block_rows is not None:
        TN = min(TN, max(8, _round_up(max_block_rows, 8)))

    # Keep >= 2 grid steps (so ("parallel",) can shard across both TensorCores on
    # v7x) whenever each step would still move >= ~1 MiB of HBM.
    min_rows_per_step = _round_up(pl.cdiv(1 << 20, F * itemsize), 8)
    half_rows = _round_up(pl.cdiv(N, 2), 8)
    if half_rows >= min_rows_per_step:
        TN = min(TN, half_rows)

    grid = (pl.cdiv(N, TN),)

    # Constant 0/1 pooling matrix: W[f, c] = 1 iff f // voter_num == c.  Entries are
    # exact in any dtype; the 1/voter_num scale is applied in f32 inside the kernel.
    w = jnp.repeat(jnp.eye(C, dtype=x.dtype), voter_num, axis=0)   # (F, C)

    precision = (jax.lax.Precision.HIGHEST if x.dtype == jnp.float32
                 else jax.lax.Precision.DEFAULT)
    kernel = functools.partial(_voting_kernel, inv_v=1.0 / voter_num,
                               precision=precision)

    return pl.pallas_call(
        kernel,
        grid=grid,
        in_specs=[
            # natural row layout, lane-dense: last dim equals the full array dim.
            pl.BlockSpec((TN, F), lambda i: (i, 0)),
            # full pooling matrix, same block every step (resident, ~F*128*4 bytes).
            pl.BlockSpec((F, C), lambda i: (0, 0)),
        ],
        out_specs=pl.BlockSpec((TN, C), lambda i: (i, 0)),
        out_shape=jax.ShapeDtypeStruct((N, C), x.dtype),
        compiler_params=pltpu.CompilerParams(
            dimension_semantics=("parallel",),
            vmem_limit_bytes=32 * 1024 * 1024,
        ),
        cost_estimate=pl.CostEstimate(
            flops=2 * N * F * C,
            transcendentals=0,
            bytes_accessed=(N * F + F * C + N * C) * itemsize,
        ),
    )(x, w)


# --- pure-JAX reference for validation ---------------------------------------
def _voting_ref(x, voter_num):
    N, F = x.shape
    C = F // voter_num
    return x[:, :C * voter_num].reshape(N, C, voter_num).mean(axis=-1)


if __name__ == "__main__":
    key = jax.random.PRNGKey(0)
    k1, k2, k3 = jax.random.split(key, 3)

    voters, classes = 10, 10   # typical SNN readout: 10 classes x 10 voters

    # Small case: batch=2 -> one (8, 100) block, grid=(1,).
    x_small = jax.random.uniform(k1, (2, classes * voters), dtype=jnp.float32)
    out_small = jax.block_until_ready(voting_forward(x_small, voters))
    ref_small = _voting_ref(x_small, voters)
    assert out_small.shape == (2, classes)
    assert jnp.allclose(out_small, ref_small, atol=1e-5, rtol=1e-5), (
        "max abs err = %g" % float(jnp.max(jnp.abs(out_small - ref_small))))

    # Medium case: still a single big block.
    x_mid = jax.random.uniform(k2, (256, classes * voters), dtype=jnp.float32)
    out_mid = jax.block_until_ready(voting_forward(x_mid, voters))
    assert jnp.allclose(out_mid, _voting_ref(x_mid, voters), atol=1e-5, rtol=1e-5)

    # Ragged multi-step grid: 250 rows with forced 64-row blocks -> 4 steps,
    # last block partial (exercises Pallas OOB masking on input and output).
    x_rag = jax.random.uniform(k3, (250, classes * voters), dtype=jnp.float32)
    out_rag = jax.block_until_ready(voting_forward(x_rag, voters, max_block_rows=64))
    assert jnp.allclose(out_rag, _voting_ref(x_rag, voters), atol=1e-5, rtol=1e-5)

    print("KERNEL_OK")
</pallas_src>

<mosaic_0001>
module attributes {stable_mosaic.version = 11 : i64} {
  func.func @_voting_kernel(%arg0: i32, %arg1: memref<8x100xf32, #tpu.memory_space<vmem>>, %arg2: memref<100x10xf32, #tpu.memory_space<vmem>>, %arg3: memref<8x10xf32, #tpu.memory_space<vmem>>) attributes {dimension_semantics = [#tpu.dimension_semantics<parallel>], iteration_bounds = array<i64: 1>, scalar_prefetch = 0 : i64, scratch_operands = 0 : i64, tpu.core_type = #tpu.core_type<tc>, window_params = [{transform_indices = @transform_0, window_bounds = array<i64: 8, 100>}, {pipeline_mode = #tpu.pipeline_mode<synchronous>, transform_indices = @transform_1, window_bounds = array<i64: 100, 10>}, {transform_indices = @transform_2, window_bounds = array<i64: 8, 10>}]} {
    %c0 = arith.constant 0 : index
    %c0_0 = arith.constant 0 : index
    %0 = vector.load %arg1[%c0, %c0_0] : memref<8x100xf32, #tpu.memory_space<vmem>>, vector<8x100xf32>
    %c0_1 = arith.constant 0 : index
    %c0_2 = arith.constant 0 : index
    %1 = vector.load %arg2[%c0_1, %c0_2] : memref<100x10xf32, #tpu.memory_space<vmem>>, vector<100x10xf32>
    %cst = arith.constant dense<0.000000e+00> : vector<8x10xf32>
    %2 = tpu.matmul %0, %1, %cst {dimension_numbers = #tpu.dot_dimension_numbers<[1], [0], [0], [1], [0, 0, 1, 1], [], []>, precision = #tpu.contract_precision<fp32>} : vector<8x100xf32>, vector<100x10xf32>, vector<8x10xf32> -> vector<8x10xf32>
    %cst_3 = arith.constant 1.000000e-01 : f32
    %3 = vector.broadcast %cst_3 : f32 to vector<8x10xf32>
    %4 = arith.mulf %2, %3 : vector<8x10xf32>
    %c0_4 = arith.constant 0 : index
    %c0_5 = arith.constant 0 : index
    %5 = vector.load %arg3[%c0_4, %c0_5] : memref<8x10xf32, #tpu.memory_space<vmem>>, vector<8x10xf32>
    tpu.vector_store %arg3[%c0_4, %c0_5], %4 {strides = array<i32>} : memref<8x10xf32, #tpu.memory_space<vmem>>, vector<8x10xf32>,
    return
  }
  func.func @transform_0(%arg0: i32) -> (i32, i32) {
    %c0_i32 = arith.constant 0 : i32
    %c0_i32_0 = arith.constant 0 : i32
    return %arg0, %c0_i32 : i32, i32
  }
  func.func @transform_1(%arg0: i32) -> (i32, i32) {
    %c0_i32 = arith.constant 0 : i32
    %c0_i32_0 = arith.constant 0 : i32
    %c0_i32_1 = arith.constant 0 : i32
    return %c0_i32, %c0_i32_0 : i32, i32
  }
  func.func @transform_2(%arg0: i32) -> (i32, i32) {
    %c0_i32 = arith.constant 0 : i32
    %c0_i32_0 = arith.constant 0 : i32
    return %arg0, %c0_i32 : i32, i32
  }
}

</mosaic_0001>

<bundles_post_ra>
// kernel: tpu_custom_call.1
= control target key start
LH: loop header
LB: loop body
LE: loop exit
PB: predicated region body
PF: predicated region fallthrough
CT: control target
= control target key end

     0   :  { %7 = vsyncpa [#allocation3], 0  ;;  %vm30_vm0 = vcmask 1043456   ;;  %vm26_vm1 = vcmask 818176   ;;  %vm337_vm2 = vcmask 80896   ;;  %s638_s0 = inlined_call_operand.vmem [shape: f32[2,100], index: 0, kind: input, shape index: {}]   ;;  %s639_s1 = inlined_call_operand.vmem [shape: f32[100,10], index: 1, kind: input, shape index: {}]   ;;  %s640_s2 = inlined_call_operand.hbm [shape: f32[2,10], index: 2, kind: output, shape index: {}]  }
   0x1   :  { %v25_v0 = vld [vmem:[%s639_s1 + $0x60] sm:$0xf]  ;;  %v24_v1 = vld [vmem:[%s639_s1 + $0x58] sm:$0xff]  ;;  %v23_v4 = vld [vmem:[%s639_s1 + $0x50] sm:$0xff] }
   0x2   :  { %v32_v2 = vsel %vm30_vm0, %v25_v0, 0  ;;  %v410_v3 = vand.u32 4294901760, %v24_v1  ;;  %v22_v5 = vld [vmem:[%s639_s1 + $0x48] sm:$0xff]  ;;  %v21_v6 = vld [vmem:[%s639_s1 + $0x40] sm:$0xff]  ;;  %v423_v8 = vand.u32 4294901760, %v23_v4  ;;  %v20_v11 = vld [vmem:[%s639_s1 + $0x38] sm:$0xff] }
   0x3   :  { %v421_v7 = vand.u32 4294901760, %v32_v2  ;;  %v425_v9 = vand.u32 4294901760, %v22_v5  ;;  %v427_v10 = vand.u32 4294901760, %v21_v6  ;;  %v19_v12 = vld [vmem:[%s639_s1 + $0x30] sm:$0xff]  ;;  %v438_v14 = vand.u32 4294901760, %v20_v11  ;;  %v18_v16 = vld [vmem:[%s639_s1 + $0x28] sm:$0xff] }
   0x4   :  { %v436_v13 = vsub.f32 %v24_v1, %v410_v3  ;;  %v440_v15 = vand.u32 4294901760, %v19_v12  ;;  %v450_v18 = vsub.f32 %v23_v4, %v423_v8  ;;  %v17_v23 = vld [vmem:[%s639_s1 + $0x20] sm:$0xff]  ;;  %v470_v27 = vand.u32 4294901760, %v18_v16  ;;  %v16_v28 = vld [vmem:[%s639_s1 + $0x18] sm:$0xff]  ;;  %v15_v37 = vld [vmem:[%s639_s1 + $0x10] sm:$0xff] }
   0x5   :  { %38 = vmatpush.msra.mxu0 %v421_v7  ;;  %v447_v17 = vsub.f32 %v32_v2, %v421_v7  ;;  %v453_v19 = vsub.f32 %v22_v5, %v425_v9  ;;  %v456_v20 = vsub.f32 %v21_v6, %v427_v10  ;;  %v460_v22 = vsub.f32 %v20_v11, %v438_v14  ;;  %v14_v43 = vld [vmem:[%s639_s1 + $0x8] sm:$0xff]  ;;  %v12_v48 = vld [vmem:[%s638_s0] sm:$0xff] }
   0x6   :  { %v83_v21 = vand.u32 4294901760, %v436_v13  ;;  %210 = vmatpush.msra.mxu3 %v421_v7  ;;  %v89_v25 = vand.u32 4294901760, %v450_v18  ;;  %v488_v33 = vand.u32 4294901760, %v17_v23  ;;  %v491_v34 = vsub.f32 %v19_v12, %v440_v15  ;;  %v13_v50 = vld [vmem:[%s639_s1] sm:$0xff] }
   0x7   :  { %40 = vmatpush.msra.mxu0 %v410_v3  ;;  %v77_v24 = vand.u32 4294901760, %v447_v17  ;;  %v95_v26 = vand.u32 4294901760, %v453_v19  ;;  %163 = vmatpush.msra.mxu2 %v447_v17  ;;  %v101_v30 = vand.u32 4294901760, %v456_v20  ;;  %v107_v35 = vand.u32 4294901760, %v460_v22 }
   0x8   :  { %v84_v29 = vsub.f32 %v436_v13, %v83_v21  ;;  %212 = vmatpush.msra.mxu3 %v410_v3  ;;  %v90_v32 = vsub.f32 %v450_v18, %v89_v25  ;;  %v495_v36 = vand.u32 4294901760, %v16_v28  ;;  %v506_v41 = vsub.f32 %v18_v16, %v470_v27 }
   0x9   :  { %42 = vmatpush.msra.mxu0 %v423_v8  ;;  %v78_v31 = vsub.f32 %v447_v17, %v77_v24  ;;  %166 = vmatpush.msra.mxu2 %v436_v13  ;;  %v96_v40 = vsub.f32 %v453_v19, %v95_v26  ;;  %v102_v42 = vsub.f32 %v456_v20, %v101_v30  ;;  %v113_v45 = vand.u32 4294901760, %v491_v34 }
   0xa   :  { %214 = vmatpush.msra.mxu3 %v423_v8  ;;  %v85_v39 = vand.u32 4294901760, %v84_v29  ;;  %v91_v44 = vand.u32 4294901760, %v90_v32  ;;  %v518_v46 = vand.u32 4294901760, %v15_v37  ;;  %v521_v47 = vsub.f32 %v17_v23, %v488_v33 }
   0xb   :  { %v79_v38 = vand.u32 4294901760, %v78_v31  ;;  %44 = vmatpush.msra.mxu0 %v425_v9  ;;  %169 = vmatpush.msra.mxu2 %v450_v18  ;;  %v108_v49 = vsub.f32 %v460_v22, %v107_v35  ;;  %v97_v51 = vand.u32 4294901760, %v96_v40  ;;  %v119_v52 = vand.u32 4294901760, %v506_v41 }
   0xc   :  { %216 = vmatpush.msra.mxu3 %v425_v9  ;;  %v536_v53 = vand.u32 4294901760, %v14_v43  ;;  %v539_v54 = vsub.f32 %v16_v28, %v495_v36  ;;  %v103_v55 = vand.u32 4294901760, %v102_v42  ;;  %v28_v56 = vsel %vm26_vm1, %v12_v48, 0 }
   0xd   :  { %80 = vmatpush.msra.mxu1 %v79_v38  ;;  %46 = vmatpush.msra.mxu0 %v427_v10  ;;  %v114_v57 = vsub.f32 %v491_v34, %v113_v45  ;;  %v125_v58 = vand.u32 4294901760, %v521_v47  ;;  %v548_v59 = vand.u32 4294901760, %v13_v50  ;;  %v551_v60 = vsub.f32 %v15_v37, %v518_v46 }
   0xe   :  { %172 = vmatpush.msra.mxu2 %v453_v19  ;;  %218 = vmatpush.msra.mxu3 %v427_v10  ;;  %v555_v61 = vand.u32 4294901760, %v28_v56  ;;  %v109_v62 = vand.u32 4294901760, %v108_v49  ;;  %v120_v63 = vsub.f32 %v506_v41, %v119_v52  ;;  %v131_v0 = vand.u32 4294901760, %v539_v54 }
   0xf   :  { %86 = vmatpush.msra.mxu1 %v85_v39  ;;  %48 = vmatpush.msra.mxu0 %v438_v14  ;;  %v563_v1 = vsub.f32 %v14_v43, %v536_v53  ;;  %v115_v4 = vand.u32 4294901760, %v114_v57  ;;  %v126_v5 = vsub.f32 %v521_v47, %v125_v58  ;;  %v137_v6 = vand.u32 4294901760, %v551_v60 }
  0x10   :  { %175 = vmatpush.msra.mxu2 %v456_v20  ;;  %220 = vmatpush.msra.mxu3 %v438_v14  ;;  %v64_v2 = vsub.f32 %v28_v56, %v555_v61  ;;  %v574_v11 = vsub.f32 %v13_v50, %v548_v59  ;;  %v121_v12 = vand.u32 4294901760, %v120_v63  ;;  %v132_v16 = vsub.f32 %v539_v54, %v131_v0 }
  0x11   :  { %92 = vmatpush.msra.mxu1 %v91_v44  ;;  %50 = vmatpush.msra.mxu0 %v440_v15  ;;  %v143_v23 = vand.u32 4294901760, %v563_v1  ;;  %v127_v29 = vand.u32 4294901760, %v126_v5  ;;  %v138_v31 = vsub.f32 %v551_v60, %v137_v6 }
  0x12   :  { %178 = vmatpush.msra.mxu2 %v460_v22  ;;  %222 = vmatpush.msra.mxu3 %v440_v15  ;;  %v65_v28 = vand.u32 4294901760, %v64_v2  ;;  %v149_v32 = vand.u32 4294901760, %v574_v11  ;;  %v133_v37 = vand.u32 4294901760, %v132_v16 }
  0x13   :  { %98 = vmatpush.msra.mxu1 %v97_v51  ;;  %52 = vmatpush.msra.mxu0 %v470_v27  ;;  %v144_v38 = vsub.f32 %v563_v1, %v143_v23  ;;  %v139_v40 = vand.u32 4294901760, %v138_v31 }
  0x14   :  { %181 = vmatpush.msra.mxu2 %v491_v34  ;;  %224 = vmatpush.msra.mxu3 %v470_v27  ;;  %v66_v39 = vsub.f32 %v64_v2, %v65_v28  ;;  %v150_v42 = vsub.f32 %v574_v11, %v149_v32 }
  0x15   :  { %104 = vmatpush.msra.mxu1 %v103_v55  ;;  %54 = vmatpush.msra.mxu0 %v488_v33  ;;  %v145_v43 = vand.u32 4294901760, %v144_v38 }
  0x16   :  { %184 = vmatpush.msra.mxu2 %v506_v41  ;;  %226 = vmatpush.msra.mxu3 %v488_v33  ;;  %v67_v44 = vand.u32 4294901760, %v66_v39  ;;  %v151_v48 = vand.u32 4294901760, %v150_v42 }
  0x17   :  { %110 = vmatpush.msra.mxu1 %v109_v62  ;;  %56 = vmatpush.msra.mxu0 %v495_v36 }
  0x18   :  { %187 = vmatpush.msra.mxu2 %v521_v47  ;;  %228 = vmatpush.msra.mxu3 %v495_v36 }
  0x19   :  { %116 = vmatpush.msra.mxu1 %v115_v4  ;;  %58 = vmatpush.msra.mxu0 %v518_v46 }
  0x1a   :  { %190 = vmatpush.msra.mxu2 %v539_v54  ;;  %230 = vmatpush.msra.mxu3 %v518_v46 }
  0x1b   :  { %122 = vmatpush.msra.mxu1 %v121_v12  ;;  %60 = vmatpush.msra.mxu0 %v536_v53 }
  0x1c   :  { %193 = vmatpush.msra.mxu2 %v551_v60  ;;  %232 = vmatpush.msra.mxu3 %v536_v53 }
  0x1d   :  { %128 = vmatpush.msra.mxu1 %v127_v29  ;;  %62 = vmatpush.msra.mxu0 %v548_v59 }
  0x1e   :  { %196 = vmatpush.msra.mxu2 %v563_v1  ;;  %234 = vmatpush.msra.mxu3 %v548_v59 }
  0x1f   :  { %248 = vmatpush.msrb.mxu0 %v77_v24  ;;  %134 = vmatpush.msra.mxu1 %v133_v37 }
  0x20   :  { %199 = vmatpush.msra.mxu2 %v574_v11  ;;  %238 = vmatmul.f32.vlgmr.msra.gmra.mxu3 %v65_v28 }
  0x21   :  { %252 = vmatpush.msrb.mxu0 %v83_v21  ;;  %140 = vmatpush.msra.mxu1 %v139_v40 }
  0x22   :  { %202 = vmatmul.f32.vlgmr.msra.gmra.mxu2 %v64_v2  ;;  %68 = vmatmul.f32.vlgmr.msra.gmra.mxu0 %v67_v44 }
  0x23   :  { %256 = vmatpush.msrb.mxu0 %v89_v25  ;;  %146 = vmatpush.msra.mxu1 %v145_v43 }
  0x25   :  { %260 = vmatpush.msrb.mxu0 %v95_v26  ;;  %152 = vmatpush.msra.mxu1 %v151_v48 }
  0x26   :  { %154 = vmatmul.f32.vlgmr.msra.gmra.mxu1 %v555_v61 }
  0x27   :  { %306 = vmatpush.msrb.mxu1 %v421_v7  ;;  %264 = vmatpush.msrb.mxu0 %v101_v30 }
  0x29   :  { %308 = vmatpush.msrb.mxu1 %v410_v3  ;;  %268 = vmatpush.msrb.mxu0 %v107_v35 }
  0x2b   :  { %310 = vmatpush.msrb.mxu1 %v423_v8  ;;  %272 = vmatpush.msrb.mxu0 %v113_v45 }
  0x2d   :  { %312 = vmatpush.msrb.mxu1 %v425_v9  ;;  %276 = vmatpush.msrb.mxu0 %v119_v52 }
  0x2f   :  { %314 = vmatpush.msrb.mxu1 %v427_v10  ;;  %280 = vmatpush.msrb.mxu0 %v125_v58 }
  0x31   :  { %316 = vmatpush.msrb.mxu1 %v438_v14  ;;  %284 = vmatpush.msrb.mxu0 %v131_v0 }
  0x33   :  { %318 = vmatpush.msrb.mxu1 %v440_v15  ;;  %288 = vmatpush.msrb.mxu0 %v137_v6 }
  0x35   :  { %320 = vmatpush.msrb.mxu1 %v470_v27  ;;  %292 = vmatpush.msrb.mxu0 %v143_v23 }
  0x37   :  { %322 = vmatpush.msrb.mxu1 %v488_v33  ;;  %296 = vmatpush.msrb.mxu0 %v149_v32 }
  0x38   :  { %298 = vmatmul.f32.vlgmr.msrb.gmra.mxu0 %v555_v61 }
  0x39   :  { %324 = vmatpush.msrb.mxu1 %v495_v36 }
  0x3b   :  { %326 = vmatpush.msrb.mxu1 %v518_v46 }
  0x3d   :  { %328 = vmatpush.msrb.mxu1 %v536_v53 }
  0x3f   :  { %330 = vmatpush.msrb.mxu1 %v548_v59 }
  0x40   :  { %332 = vmatmul.f32.vlgmr.msrb.gmra.mxu1 %v555_v61 }
  0x9f   :  { %v69_v7 = vpop.f32.mrf.mxu0 }
  0xa3   :  { %v155_v3 = vpop.f32.mrf.mxu1  ;;  %v239_v13 = vpop.f32.mrf.mxu3 }
  0xa4   :  { %v156_v8 = vadd.f32 %v155_v3, %v69_v7 }
  0xa5   :  { %v203_v9 = vpop.f32.mrf.mxu2 }
  0xa6   :  { %v204_v10 = vadd.f32 %v203_v9, %v156_v8 }
  0xa8   :  { %v240_v14 = vadd.f32 %v239_v13, %v204_v10 }
  0xb5   :  { %v299_v15 = vpop.f32.mrf.mxu0 }
  0xb6   :  { %v300_v17 = vadd.f32 %v299_v15, %v240_v14 }
  0xbd   :  { %v333_v18 = vpop.f32.mrf.mxu1 }
  0xbe   :  { %v334_v19 = vadd.f32 %v333_v18, %v300_v17 }
  0xc0   :  { %v336_v20 = vmul.f32 0.1, %v334_v19 }
  0xc2   :  { %338 = vst.msk [vmem:[#allocation2] sm:$0xff] %vm337_vm2, %v336_v20 }
  0xc3   :  { %342 = vsyncadd [#allocation3], 96  ;;  %s345_s9 = sshll.u32 %s640_s2, 4  ;;  %s386_s10 = smov [#allocation2]   ;;  %s346_s9 = int_to_ptr.hbm [resolvable:$true] %s345_s9 }
  0xc4   :  { %s343_s11 = sshll.u32 %s386_s10, 4  ;;  %s387_s12 = smov 32   ;;  %s344_s11 = int_to_ptr.vmem [resolvable:$true] %s343_s11 }
  0xc5   :  { %s388_s13 = smov 2  }
  0xc6   :  { %351 = dma.vmem_to_hbm [thread:$0]  %s344_s11, 32, %s346_s9, [#allocation3], %s387_s12, %s387_s12, %s388_s13  }
  0xc7   :  { %384 = dma.done.wait [#allocation3], 128  }
  0xc8   :  { %385 = vsyncadd [#allocation3], 4294967168 }
  0xc9   :  { %356 = vsyncpa [#allocation3], 1 }

</bundles_post_ra>
